<compile_context>
chip_gen: v5e
topology: v5e:2x2
jax: 0.10.0
libtpu: 0.0.40
codegen_flags: <defaults>
</compile_context>

<pallas_src>
import functools

import jax
import jax.numpy as jnp
from jax.experimental import pallas as pl
from jax.experimental.pallas import tpu as pltpu


_LANES = 128
_VMEM_LIMIT_BYTES = 48 * 1024 * 1024   # <= physical VMEM on v5e/v6e (128 MiB) and v7x (64 MiB)


# --------------------------------------------------------------------------------------
# Fast path: whole sample resident -> fused stats + normalize (1 read + 1 write of x).
# --------------------------------------------------------------------------------------
def _fused_ln_kernel(x_ref, gamma_ref, beta_ref, o_ref, *, n_elems, eps):
    x = x_ref[...].astype(jnp.float32)                      # (1, C, HW), in-register upcast
    mean = jnp.sum(x) * (1.0 / n_elems)
    xc = x - mean
    # Exact centered second moment while the tile is resident (review concern #1: avoids
    # the E[x^2] - mean^2 catastrophic cancellation), fp32 accumulation throughout.
    var = jnp.sum(xc * xc) * (1.0 / max(n_elems - 1.0, 1.0))   # unbiased (ddof=1)
    std = jnp.sqrt(var)
    # Module semantics: out = gamma_c * (x - mean) / (std + eps + beta_c)
    scale = gamma_ref[...] / (std + eps + beta_ref[...])    # (1, C, 1) lane-broadcast column
    o_ref[...] = (xc * scale).astype(o_ref.dtype)


def _fused_path(x3, gamma_col, beta_col, eps):
    N, C, HW = x3.shape
    F = C * HW
    itemsize = jnp.dtype(x3.dtype).itemsize
    kernel = functools.partial(_fused_ln_kernel, n_elems=float(F), eps=float(eps))
    return pl.pallas_call(
        kernel,
        out_shape=jax.ShapeDtypeStruct((N, C, HW), x3.dtype),
        grid_spec=pltpu.PrefetchScalarGridSpec(
            num_scalar_prefetch=0,
            grid=(N,),
            in_specs=[
                pl.BlockSpec((1, C, HW), lambda n: (n, 0, 0)),   # whole sample per step
                pl.BlockSpec((1, C, 1), lambda n: (0, 0, 0)),    # gamma: C floats, never expanded
                pl.BlockSpec((1, C, 1), lambda n: (0, 0, 0)),    # beta
            ],
            out_specs=pl.BlockSpec((1, C, HW), lambda n: (n, 0, 0)),
        ),
        compiler_params=pltpu.CompilerParams(
            dimension_semantics=("parallel",),
            vmem_limit_bytes=_VMEM_LIMIT_BYTES,
        ),
        cost_estimate=pl.CostEstimate(
            flops=5 * N * F,
            transcendentals=N,
            bytes_accessed=2 * N * F * itemsize + 2 * C * 4,
        ),
    )(x3, gamma_col, beta_col)


# --------------------------------------------------------------------------------------
# Big-sample path: two passes, whole channel per grid step, grid (N, C) fully parallel.
# --------------------------------------------------------------------------------------
def _channel_stats_kernel(x_ref, mean_ref, m2_ref, *, hw, n_pad):
    x = x_ref[...].astype(jnp.float32)                # (1, 1, RH, 128); tail zero-padded
    mean = jnp.sum(x) * (1.0 / hw)                    # padded zeros do not perturb the sum
    xc = x - mean
    # Exact centered M2; drop the n_pad spurious (0 - mean)^2 terms from the zero padding.
    m2 = jnp.sum(xc * xc) - n_pad * (mean * mean)
    mean_ref[...] = jnp.broadcast_to(mean.reshape(1, 1, 1, 1), mean_ref.shape)
    m2_ref[...] = jnp.broadcast_to(m2.reshape(1, 1, 1, 1), m2_ref.shape)


def _channel_affine_kernel(scale_ref, shift_ref, x_ref, o_ref, *, n_chan):
    # scale/shift are per-(sample, channel) scalars living in SMEM: the HBM streams of this
    # pass are exactly one read of x and one write of out (review item #2).
    idx = pl.program_id(0) * n_chan + pl.program_id(1)
    x = x_ref[...].astype(jnp.float32)
    o_ref[...] = (x * scale_ref[idx] + shift_ref[idx]).astype(o_ref.dtype)


def _two_pass_path(x3, gamma_c, beta_c, eps):
    N, C, HW = x3.shape
    F = C * HW
    out_dtype = x3.dtype
    itemsize = jnp.dtype(x3.dtype).itemsize

    HWp = -(-HW // _LANES) * _LANES
    n_pad = HWp - HW
    padded = n_pad > 0
    if padded:
        # TODO(synk): mask the ragged tail in-kernel (broadcasted_iota) instead of this one-off
        # pad copy; only hit when H*W % 128 != 0.
        x3 = jnp.pad(x3, ((0, 0), (0, 0), (0, n_pad)))
    RH = HWp // _LANES
    x4 = x3.reshape(N, C, RH, _LANES)

    # ---- pass 1: exact per-channel mean / centered M2, fully parallel grid ------------
    stats_kernel = functools.partial(
        _channel_stats_kernel, hw=float(HW), n_pad=float(n_pad))
    mean_pc, m2_pc = pl.pallas_call(
        stats_kernel,
        out_shape=(
            jax.ShapeDtypeStruct((N, C, 8, _LANES), jnp.float32),
            jax.ShapeDtypeStruct((N, C, 8, _LANES), jnp.float32),
        ),
        grid_spec=pltpu.PrefetchScalarGridSpec(
            num_scalar_prefetch=0,
            grid=(N, C),
            in_specs=[pl.BlockSpec((1, 1, RH, _LANES), lambda n, c: (n, c, 0, 0))],
            out_specs=[
                pl.BlockSpec((1, 1, 8, _LANES), lambda n, c: (n, c, 0, 0)),
                pl.BlockSpec((1, 1, 8, _LANES), lambda n, c: (n, c, 0, 0)),
            ],
        ),
        compiler_params=pltpu.CompilerParams(
            dimension_semantics=("parallel", "parallel"),   # v7x: both TCs busy even at N==1
            vmem_limit_bytes=_VMEM_LIMIT_BYTES,
        ),
        cost_estimate=pl.CostEstimate(
            flops=4 * N * C * HWp,
            transcendentals=0,
            bytes_accessed=N * C * HWp * itemsize + 2 * N * C * 8 * _LANES * 4,
        ),
    )(x4)

    # ---- tiny XLA epilogue: Chan combine across channels + fold gamma/beta ------------
    mean_c = mean_pc[:, :, 0, 0]                                   # (N, C)
    m2_c = m2_pc[:, :, 0, 0]
    mean = jnp.mean(mean_c, axis=1, keepdims=True)                 # equal counts per channel
    m2 = jnp.sum(m2_c, axis=1, keepdims=True) + HW * jnp.sum(
        jnp.square(mean_c - mean), axis=1, keepdims=True)
    var = m2 * (1.0 / max(F - 1.0, 1.0))                           # unbiased (ddof=1)
    std = jnp.sqrt(jnp.maximum(var, 0.0))                          # (N, 1)
    scale = gamma_c[None, :] / (std + eps + beta_c[None, :])       # (N, C)
    shift = -mean * scale                                          # (N, C)

    # ---- pass 2: out = x * scale_nc + shift_nc  (single FMA inner loop) ---------------
    affine_kernel = functools.partial(_channel_affine_kernel, n_chan=C)
    out4 = pl.pallas_call(
        affine_kernel,
        out_shape=jax.ShapeDtypeStruct((N, C, RH, _LANES), out_dtype),
        grid_spec=pltpu.PrefetchScalarGridSpec(
            num_scalar_prefetch=0,
            grid=(N, C),
            in_specs=[
                pl.BlockSpec(memory_space=pltpu.MemorySpace.SMEM),   # scale (N*C,)
                pl.BlockSpec(memory_space=pltpu.MemorySpace.SMEM),   # shift (N*C,)
                pl.BlockSpec((1, 1, RH, _LANES), lambda n, c: (n, c, 0, 0)),
            ],
            out_specs=pl.BlockSpec((1, 1, RH, _LANES), lambda n, c: (n, c, 0, 0)),
        ),
        compiler_params=pltpu.CompilerParams(
            dimension_semantics=("parallel", "parallel"),
            vmem_limit_bytes=_VMEM_LIMIT_BYTES,
        ),
        # Alias x -> out only when x4 is a fresh padded intermediate (never a live caller buffer).
        input_output_aliases=({2: 0} if padded else {}),
        cost_estimate=pl.CostEstimate(
            flops=2 * N * C * HWp,
            transcendentals=0,
            bytes_accessed=2 * N * C * HWp * itemsize + 2 * N * C * 4,
        ),
    )(scale.reshape(N * C).astype(jnp.float32),
      shift.reshape(N * C).astype(jnp.float32),
      x4)

    out3 = out4.reshape(N, C, HWp)
    if padded:
        out3 = out3[:, :, :HW]
    return out3


# --------------------------------------------------------------------------------------
# Public wrapper (matches the PyTorch module's parameter shapes and math).
# --------------------------------------------------------------------------------------
def layer_norm_2d(z, gamma, beta, eps=1e-6, *,
                  force_two_pass=False,
                  fused_sample_limit_bytes=4 * 1024 * 1024,
                  channel_limit_bytes=6 * 1024 * 1024):
    """LayerNorm2d forward (the 'ln' normalization of spatialAttention's ConvBN blocks).

    z:     (N, C, H, W)
    gamma: (1, C, 1, 1)   (module init: ones)
    beta:  (1, C, 1, 1)   (module init: zeros)

    out = gamma_c * (z - mean_n) / (std_n + eps + beta_c), with mean/std over each sample's
    flattened C*H*W elements and std unbiased (ddof=1) — exactly the PyTorch code.
    """
    N, C, H, W = z.shape
    HW = H * W
    F = C * HW
    gamma_c = gamma.reshape(C).astype(jnp.float32)
    beta_c = beta.reshape(C).astype(jnp.float32)
    x3 = z.reshape(N, C, HW)                       # free view, no copy

    if not force_two_pass and F * 4 <= fused_sample_limit_bytes:
        out3 = _fused_path(x3, gamma_c.reshape(1, C, 1), beta_c.reshape(1, C, 1), eps)
        return out3.reshape(N, C, H, W)

    if (-(-HW // _LANES) * _LANES) * 4 > channel_limit_bytes:
        # TODO(synk): megapixel channels need an extra HW-tiling grid axis with per-tile
        # partial stats; fall back to plain XLA for that rare case.
        xf = z.reshape(N, F).astype(jnp.float32)
        mean = jnp.mean(xf, axis=1).reshape(N, 1, 1, 1)
        std = jnp.std(xf, axis=1, ddof=1).reshape(N, 1, 1, 1)
        out = gamma_c.reshape(1, C, 1, 1) * (z.astype(jnp.float32) - mean)
        out = out / (std + eps + beta_c.reshape(1, C, 1, 1))
        return out.astype(z.dtype)

    out3 = _two_pass_path(x3, gamma_c, beta_c, eps)
    return out3.reshape(N, C, H, W)


if __name__ == "__main__":
    key = jax.random.PRNGKey(0)
    kx, kg, kb = jax.random.split(key, 3)
    N, C, H, W = 2, 4, 16, 16
    eps = 1e-6

    x = jax.random.normal(kx, (N, C, H, W), dtype=jnp.float32)

    # Module init (gamma ones, beta zeros) plus a non-trivial affine set to exercise the
    # per-channel denominator handling.
    param_sets = [
        (jnp.ones((1, C, 1, 1), jnp.float32), jnp.zeros((1, C, 1, 1), jnp.float32)),
        (1.0 + 0.1 * jax.random.normal(kg, (1, C, 1, 1), jnp.float32),
         0.1 * jax.random.normal(kb, (1, C, 1, 1), jnp.float32)),
    ]

    def reference(z, g, b):
        zf = z.reshape(N, -1)
        mean = jnp.mean(zf, axis=1).reshape(N, 1, 1, 1)
        std = jnp.std(zf, axis=1, ddof=1).reshape(N, 1, 1, 1)
        return g * (z - mean) / (std + eps + b)

    fused = jax.jit(functools.partial(layer_norm_2d, eps=eps))
    two_pass = jax.jit(functools.partial(layer_norm_2d, eps=eps, force_two_pass=True))

    for g, b in param_sets:
        want = reference(x, g, b)
        for name, fn in (("fused", fused), ("two_pass", two_pass)):
            got = jax.block_until_ready(fn(x, g, b))
            assert jnp.allclose(got, want, atol=1e-4, rtol=1e-4), f"{name} mismatch vs reference"

    print("KERNEL_OK")
</pallas_src>

<mosaic_0001>
module attributes {stable_mosaic.version = 11 : i64} {
  func.func @_fused_ln_kernel(%arg0: i32, %arg1: memref<1x4x256xf32, #tpu.memory_space<vmem>>, %arg2: memref<1x4x1xf32, #tpu.memory_space<vmem>>, %arg3: memref<1x4x1xf32, #tpu.memory_space<vmem>>, %arg4: memref<1x4x256xf32, #tpu.memory_space<vmem>>) attributes {dimension_semantics = [#tpu.dimension_semantics<parallel>], iteration_bounds = array<i64: 2>, scalar_prefetch = 0 : i64, scratch_operands = 0 : i64, tpu.core_type = #tpu.core_type<tc>, window_params = [{transform_indices = @transform_0, window_bounds = array<i64: 1, 4, 256>}, {pipeline_mode = #tpu.pipeline_mode<synchronous>, transform_indices = @transform_1, window_bounds = array<i64: 1, 4, 1>}, {pipeline_mode = #tpu.pipeline_mode<synchronous>, transform_indices = @transform_2, window_bounds = array<i64: 1, 4, 1>}, {transform_indices = @transform_3, window_bounds = array<i64: 1, 4, 256>}]} {
    %c0 = arith.constant 0 : index
    %c0_0 = arith.constant 0 : index
    %c0_1 = arith.constant 0 : index
    %0 = vector.load %arg1[%c0, %c0_0, %c0_1] : memref<1x4x256xf32, #tpu.memory_space<vmem>>, vector<1x4x256xf32>
    %1 = vector.shape_cast %0 : vector<1x4x256xf32> to vector<1x1x4x256xf32>
    %cst = arith.constant dense<0.000000e+00> : vector<1xf32>
    %2 = vector.multi_reduction <add>, %1, %cst [1, 2, 3] : vector<1x1x4x256xf32> to vector<1xf32>
    %3 = vector.shape_cast %2 : vector<1xf32> to vector<1x1x1x1xf32>
    %4 = vector.extract %3[0, 0, 0, 0] : f32 from vector<1x1x1x1xf32>
    %cst_2 = arith.constant 9.765625E-4 : f32
    %5 = arith.mulf %4, %cst_2 : f32
    %6 = vector.broadcast %5 : f32 to vector<1x4x256xf32>
    %7 = arith.subf %0, %6 : vector<1x4x256xf32>
    %8 = arith.mulf %7, %7 : vector<1x4x256xf32>
    %9 = vector.shape_cast %8 : vector<1x4x256xf32> to vector<1x1x4x256xf32>
    %cst_3 = arith.constant dense<0.000000e+00> : vector<1xf32>
    %10 = vector.multi_reduction <add>, %9, %cst_3 [1, 2, 3] : vector<1x1x4x256xf32> to vector<1xf32>
    %11 = vector.shape_cast %10 : vector<1xf32> to vector<1x1x1x1xf32>
    %12 = vector.extract %11[0, 0, 0, 0] : f32 from vector<1x1x1x1xf32>
    %cst_4 = arith.constant 9.77517105E-4 : f32
    %13 = arith.mulf %12, %cst_4 : f32
    %14 = math.sqrt %13 : f32
    %c0_5 = arith.constant 0 : index
    %c0_6 = arith.constant 0 : index
    %c0_7 = arith.constant 0 : index
    %15 = vector.load %arg2[%c0_5, %c0_6, %c0_7] : memref<1x4x1xf32, #tpu.memory_space<vmem>>, vector<1x4x1xf32>
    %cst_8 = arith.constant 9.99999997E-7 : f32
    %16 = arith.addf %14, %cst_8 : f32
    %c0_9 = arith.constant 0 : index
    %c0_10 = arith.constant 0 : index
    %c0_11 = arith.constant 0 : index
    %17 = vector.load %arg3[%c0_9, %c0_10, %c0_11] : memref<1x4x1xf32, #tpu.memory_space<vmem>>, vector<1x4x1xf32>
    %18 = vector.broadcast %16 : f32 to vector<1x4x1xf32>
    %19 = arith.addf %18, %17 : vector<1x4x1xf32>
    %20 = arith.divf %15, %19 : vector<1x4x1xf32>
    %21 = vector.broadcast %20 : vector<1x4x1xf32> to vector<1x4x256xf32>
    %22 = arith.mulf %7, %21 : vector<1x4x256xf32>
    %c0_12 = arith.constant 0 : index
    %c0_13 = arith.constant 0 : index
    %c0_14 = arith.constant 0 : index
    %23 = vector.load %arg4[%c0_12, %c0_13, %c0_14] : memref<1x4x256xf32, #tpu.memory_space<vmem>>, vector<1x4x256xf32>
    tpu.vector_store %arg4[%c0_12, %c0_13, %c0_14], %22 {strides = array<i32>} : memref<1x4x256xf32, #tpu.memory_space<vmem>>, vector<1x4x256xf32>,
    return
  }
  func.func @transform_0(%arg0: i32) -> (i32, i32, i32) {
    %c0_i32 = arith.constant 0 : i32
    %c0_i32_0 = arith.constant 0 : i32
    %c0_i32_1 = arith.constant 0 : i32
    return %arg0, %c0_i32, %c0_i32_0 : i32, i32, i32
  }
  func.func @transform_1(%arg0: i32) -> (i32, i32, i32) {
    %c0_i32 = arith.constant 0 : i32
    %c0_i32_0 = arith.constant 0 : i32
    %c0_i32_1 = arith.constant 0 : i32
    %c0_i32_2 = arith.constant 0 : i32
    return %c0_i32, %c0_i32_0, %c0_i32_1 : i32, i32, i32
  }
  func.func @transform_2(%arg0: i32) -> (i32, i32, i32) {
    %c0_i32 = arith.constant 0 : i32
    %c0_i32_0 = arith.constant 0 : i32
    %c0_i32_1 = arith.constant 0 : i32
    %c0_i32_2 = arith.constant 0 : i32
    return %c0_i32, %c0_i32_0, %c0_i32_1 : i32, i32, i32
  }
  func.func @transform_3(%arg0: i32) -> (i32, i32, i32) {
    %c0_i32 = arith.constant 0 : i32
    %c0_i32_0 = arith.constant 0 : i32
    %c0_i32_1 = arith.constant 0 : i32
    return %arg0, %c0_i32, %c0_i32_0 : i32, i32, i32
  }
}

</mosaic_0001>

<bundles_post_ra>
// kernel: layer_norm_2d.1
= control target key start
LH: loop header
LB: loop body
LE: loop exit
PB: predicated region body
PF: predicated region fallthrough
CT: control target
= control target key end

     0   :  { %s379_s12 = smov 0   ;;  %s418_s0 = inlined_call_operand.vmem [shape: f32[2,4,256], index: 0, kind: input, shape index: {}]   ;;  %s419_s1 = inlined_call_operand.vmem [shape: f32[1,4,1], index: 1, kind: input, shape index: {}]   ;;  %s420_s2 = inlined_call_operand.vmem [shape: f32[1,4,1], index: 2, kind: input, shape index: {}]   ;;  %s421_s3 = inlined_call_operand.vmem [shape: f32[2,4,256], index: 3, kind: output, shape index: {}]  }
   0x1 LB: > { %s314_s13 = sadd.s32 4294967295, %s355_s12   ;;  %p318_p0 = scmp.ge.s32.totalorder %s355_s12, 1  ;;  %s355_s12 = sphi %s379_s12, %s13_s12  }
   0x2   : > { %p137_p1 = scmp.lt.s32.totalorder %s355_s12, 3 }
   0x4   : > { %p138_p2 = pnand %p318_p0, %p137_p1 }
   0x5   : > { %p161_p3 = scmp.lt.s32.totalorder (!%p138_p2), %s314_s13, 1 }
   0x6   : > { %141 = sbr.rel (%p138_p2) target bundleno = 618 (0x26a), region = 32 }
   0xb   : > { %s423_s13 = smov (!%p161_p3, %s314_s13), 1  ;;  %vm178_vm0 = vcmask 1043456   ;;  %v357_v39 = vmov 0   ;;  %v230_v40 = vld [vmem:[%s420_s2] sm:$0xf] }
   0xc   : > { %s325_s14 = sshll.u32 %s423_s13, 3  ;;  %343 = vset.pattern.permute.xlu1 %v357_v39  ;;  %344 = vset.pattern.permute.xlu0 %v357_v39  ;;  %v228_v50 = vld [vmem:[%s419_s1] sm:$0xf]  ;;  %v358_v55 = vmov 839922192  }
   0xd   : > { %s165_s17 = scalar_lea.vmem %s418_s0, %s325_s14  ;;  %v253_v56 = vunpack.c.l.s4 %v358_v55  ;;  %s170_s30 = scalar_lea.vmem %s421_s3, %s325_s14 }
   0xe   : > { %v171_v0 = vld [vmem:[%s165_s17] sm:$0xff] }
   0xf   : > { %173 = vst [vmem:[#allocation1] ss:$2 sm:$0xff] %v171_v0  ;;  %v254_v57 = vunpack.c.0.s8 %v253_v56 }
  0x16   : > { %v174_v1 = vld.sshfl [vmem:[#allocation1] sm:$0xff pattern:$0x75316420]  ;;  %v175_v2 = vld.sshfl [vmem:[#allocation1 + $0x8] sm:$0xff pattern:$0x75316420] }
  0x17   : > { %v179_v3 = vsel %vm178_vm0, %v174_v1, 0.0  ;;  %v180_v4 = vsel %vm178_vm0, %v175_v2, 0.0 }
  0x18   : > { %v181_v5 = vadd.f32 %v180_v4, %v179_v3 }
  0x1a   : > { %182 = vadd.xlane.f32.xlu0 %v181_v5 }
  0x8d   : > { %v183_v6 = vpop.xlane.xlu0 %182 }
  0x8e   : > { %v184_v7 = vrot.slane %v183_v6, 4 }
  0x90   : > { %v185_v8 = vadd.f32 %v184_v7, %v183_v6 }
  0x92   : > { %v186_v9 = vrot.slane %v185_v8, 2 }
  0x94   : > { %v187_v10 = vadd.f32 %v186_v9, %v185_v8 }
  0x96   : > { %v188_v11 = vrot.slane %v187_v10, 1 }
  0x98   : > { %v189_v12 = vadd.f32 %v188_v11, %v187_v10 }
  0x9a   : > { %327 = vpush %v189_v12 }
  0xcb   : > { %s328_s18 = spop %327 }
  0xcc   : > { %s191_s19 = smul.f32 0.0009765625, %s328_s18 }
  0xce   : > { %v192_v13 = vstv %s191_s19 }
  0xcf   : > { %v397_v14 = vsub.f32 %v171_v0, %v192_v13 }
  0xd1   : > { %v194_v15 = vmul.f32 %v397_v14, %v397_v14 }
  0xd3   : > { %196 = vst [vmem:[#allocation1] ss:$2 sm:$0xff] %v194_v15 }
  0xda   : > { %v197_v16 = vld.sshfl [vmem:[#allocation1] sm:$0xff pattern:$0x75316420]  ;;  %v198_v17 = vld.sshfl [vmem:[#allocation1 + $0x8] sm:$0xff pattern:$0x75316420] }
  0xdb   : > { %v201_v18 = vsel %vm178_vm0, %v197_v16, 0.0  ;;  %v202_v19 = vsel %vm178_vm0, %v198_v17, 0.0 }
  0xdc   : > { %v203_v20 = vadd.f32 %v202_v19, %v201_v18 }
  0xde   : > { %204 = vadd.xlane.f32.xlu0 %v203_v20 }
 0x151   : > { %v205_v21 = vpop.xlane.xlu0 %204 }
 0x152   : > { %v206_v22 = vrot.slane %v205_v21, 4 }
 0x154   : > { %v207_v23 = vadd.f32 %v206_v22, %v205_v21 }
 0x156   : > { %v208_v24 = vrot.slane %v207_v23, 2 }
 0x158   : > { %v209_v25 = vadd.f32 %v208_v24, %v207_v23 }
 0x15a   : > { %v210_v26 = vrot.slane %v209_v25, 1 }
 0x15c   : > { %v211_v27 = vadd.f32 %v210_v26, %v209_v25 }
 0x15e   : > { %329 = vpush %v211_v27 }
 0x18f   : > { %s330_s20 = spop %329 }
 0x190   : > { %s213_s21 = smul.f32 0.0009775171, %s330_s20 }
 0x192   : > { %v214_v28 = vstv %s213_s21 }
 0x193   : > { %345 = vrsqrt.f32 %v214_v28  ;;  %vm222_vm1 = vcmp.eq.f32.partialorder %v214_v28, inf  ;;  %v225_v36 = vand.u32 2147483648, %v214_v28  ;;  %vm224_vm2 = vcmp.eq.f32.partialorder %v214_v28, 0.0 }
 0x199   : > { %v346_v29 = vpop.eup %345 }
 0x19a   : > { %v216_v30 = vmul.f32 %v346_v29, %v214_v28 }
 0x19c   : > { %v217_v31 = vmul.f32 %v346_v29, %v216_v30 }
 0x19e   : > { %v218_v32 = vmul.f32 0.5, %v217_v31 }
 0x1a0   : > { %v219_v33 = vsub.f32 1.5, %v218_v32 }
 0x1a2   : > { %v220_v34 = vmul.f32 %v346_v29, %v219_v33 }
 0x1a4   : > { %v221_v35 = vmul.f32 %v220_v34, %v214_v28 }
 0x1a6   : > { %v223_v37 = vsel %vm222_vm1, %v214_v28, %v221_v35 }
 0x1a7   : > { %v226_v38 = vsel %vm224_vm2, %v225_v36, %v223_v37 }
 0x1a8   : > { %331 = vpush %v226_v38 }
 0x1d9   : > { %s332_s22 = spop %331 }
 0x1da   : > { %s229_s23 = sadd.f32 1e-06, %s332_s22 }
 0x1dc   : > { %v231_v41 = vstv %s229_s23 }
 0x1dd   : > { %v232_v42 = vadd.f32 %v231_v41, %v230_v40 }
 0x1df   : > { %347 = vrcp.f32 %v232_v42  ;;  %v244_v46 = vand.u32 2147483648, %v232_v42  ;;  %v242_v48 = vand.u32 2147483647, %v232_v42  ;;  %vm238_vm4 = vweird.f32 %v232_v42 }
 0x1e1   : > { %v245_v51 = vor.u32 1.1754944e-38, %v244_v46  ;;  %vm243_vm6 = vcmp.eq.f32.partialorder %v242_v48, 8.507059e+37 }
 0x1e5   : > { %v348_v43 = vpop.eup %347 }
 0x1e6   : > { %v234_v44 = vmul.f32 %v348_v43, %v232_v42  ;;  %vm239_vm3 = vweird.f32 %v348_v43 }
 0x1e7   : > { %vm240_vm5 = vmor %vm238_vm4, %vm239_vm3 }
 0x1e8   : > { %v235_v45 = vsub.f32 1.0, %v234_v44 }
 0x1ea   : > { %v236_v47 = vmul.f32 %v348_v43, %v235_v45 }
 0x1ec   : > { %v237_v49 = vadd.f32 %v348_v43, %v236_v47 }
 0x1ee   : > { %v241_v52 = vsel %vm240_vm5, %v348_v43, %v237_v49 }
 0x1ef   : > { %v246_v53 = vsel %vm243_vm6, %v245_v51, %v241_v52 }
 0x1f0   : > { %v247_v54 = vmul.f32 %v246_v53, %v228_v50 }
 0x1f2   : > { %250 = vperm.xlu1 %343, %v247_v54  }
 0x264   : > { %v251_v58 = vpop.permute.xlu1 %250 }
 0x265   : > { %v255_v59 = vperm.slane %v251_v58, %v254_v57 }
 0x267   : > { %v257_v60 = vmul.f32 %v255_v59, %v397_v14 }
 0x269   : > { %258 = vst [vmem:[%s170_s30] sm:$0xff] %v257_v60 }
 0x26a PF: > { %s13_s12 = sadd.s32 1, %s355_s12  }
 0x26b   : > { %p10_p4 = scmp.ge.s32.totalorder %s13_s12, 4  }
 0x26d   :  { %12 = sbr.rel (!%p10_p4) target bundleno = 1 (0x1), region = 62 }

</bundles_post_ra>
